<compile_context>
chip_gen: v6e
topology: v6e:2x2x1
jax: 0.10.0
libtpu: 0.0.40
codegen_flags: <defaults>
</compile_context>

<pallas_src>
import functools
import math

import jax
import jax.numpy as jnp
from jax import lax
from jax.experimental import pallas as pl
from jax.experimental.pallas import tpu as pltpu


# ----------------------------------------------------------------------------
# Fused kernel: 1x1 conv + BN + ReLU  ->  depthwise KxK conv + BN + ReLU
# Channels-first per image: C on sublanes, H*W on the (dense) lane axis.
# ----------------------------------------------------------------------------
def _ghost_kernel(x_ref, pww_ref, pws_ref, pwb_ref, dww_ref, dws_ref, dwb_ref,
                  pw_out_ref, dw_out_ref, xp_ref, *,
                  HW, W, Cin, C, K, B, padl, use_mxu):
    # x_ref      : (B, Cin, HW)        input images (NCHW, H/W flattened)
    # pww_ref    : (C, Cin)            1x1 conv weight
    # pws/pwb    : (C, 1)              folded-BN scale / bias (primary conv)
    # dww_ref    : (C, K*K)            depthwise weights (channel multiplier 1)
    # dws/dwb    : (C, 1)              folded-BN scale / bias (cheap op)
    # pw_out_ref : (B, C, HW)          primary conv output (first concat half)
    # dw_out_ref : (B, C, HW)          cheap-op output     (second concat half)
    # xp_ref     : (C, padl+HW+pade)   flat zero-padded strip for the taps
    f32 = jnp.float32
    pad = K // 2
    pade = pad * W + pad                       # flat halo width per side

    # Zero only the tiny halo strips (the interior is overwritten per image).
    # Done unconditionally every step: safe under megacore scratch duplication.
    if pade:
        xp_ref[:, 0:padl] = jnp.zeros((C, padl), f32)
        xp_ref[:, padl + HW:padl + HW + pade] = jnp.zeros((C, pade), f32)

    # Hoisted parameter loads (grid-step invariant).
    pww = pww_ref[...]
    pws, pwb = pws_ref[...], pwb_ref[...]
    dww = dww_ref[...]
    dws, dwb = dws_ref[...], dwb_ref[...]

    # Column (W-boundary) masks for the depthwise taps: depend only on kx.
    w_idx = lax.broadcasted_iota(jnp.int32, (1, HW), 1) % W
    col_mask = []
    for kx in range(K):
        dx = kx - pad
        if dx == 0:
            col_mask.append(None)
        else:
            m = jnp.logical_and(w_idx + dx >= 0, w_idx + dx < W)
            col_mask.append(m.astype(f32))

    for b in range(B):                         # static unroll over the batch tile
        x_img = x_ref[b]                       # (Cin, HW)

        # ---- primary conv: 1x1 conv + BN affine + ReLU ----------------------
        if use_mxu:
            # Production path: bf16 operands, f32 accumulation on the MXU.
            y = jnp.dot(pww, x_img, preferred_element_type=f32)
        else:
            # Tiny Cin: Cin broadcast-FMAs on the VPU beat an MXU push/pop.
            y = jnp.zeros((C, HW), f32)
            for ci in range(Cin):
                y = y + pww[:, ci:ci + 1] * x_img[ci:ci + 1, :].astype(f32)
        pw = jnp.maximum(y * pws + pwb, 0.0)
        pw_out_ref[b] = pw.astype(pw_out_ref.dtype)      # lane-dense store

        # ---- cheap operation: depthwise KxK conv + BN affine + ReLU ---------
        # Stage pw into the flat-padded strip (128-aligned, lane-dense store).
        # Tap (ky, kx) is then the contiguous slice at offset ky*W + kx within
        # the strip; out-of-row reads are killed by col_mask and out-of-image
        # rows fall into the zero halo, so no 2-D halo / full re-zeroing needed.
        xp_ref[:, padl:padl + HW] = pw
        acc = jnp.zeros((C, HW), f32)
        for ky in range(K):
            for kx in range(K):
                t = ky * K + kx
                off = padl - pade + ky * W + kx
                tap = xp_ref[:, off:off + HW]
                if col_mask[kx] is not None:
                    tap = tap * col_mask[kx]
                acc = acc + tap * dww[:, t:t + 1]
        dw = jnp.maximum(acc * dws + dwb, 0.0)
        dw_out_ref[b] = dw.astype(dw_out_ref.dtype)      # lane-dense store


# ----------------------------------------------------------------------------
# GhostModule wrapper (NCHW in / NCHW out, matching the PyTorch module)
# ----------------------------------------------------------------------------
def ghost_module_forward(x_nchw, params, out_channels, kernel_size):
    pw_w = params["pw_w"]          # (Cinit, Cin, 1, 1)   PyTorch OIHW
    dw_w = params["dw_w"]          # (Cnew, 1, K, K)      PyTorch OIHW, groups=Cinit

    N, Cin, H, W = x_nchw.shape
    C = pw_w.shape[0]              # init_channels
    K = kernel_size
    HW = H * W
    if dw_w.shape[0] != C or dw_w.shape[1] != 1:
        # TODO(synk): ratio > 2 (depthwise channel multiplier > 1) not implemented.
        raise NotImplementedError("only ratio=2 (depthwise multiplier 1) supported")

    f32 = jnp.float32
    use_mxu = Cin >= 32            # tiny-C layers stay on the VPU (review item)

    # NCHW with H,W flattened -> (N, Cin, H*W): free metadata reshape; puts the
    # large H*W dimension on the lane axis for both input DMA and compute.
    x_rows = x_nchw.reshape(N, Cin, HW)
    if use_mxu:
        x_rows = x_rows.astype(jnp.bfloat16)             # bf16 MXU operands
        pw_w2d = pw_w.reshape(C, Cin).astype(jnp.bfloat16)
    else:
        x_rows = x_rows.astype(f32)
        pw_w2d = pw_w.reshape(C, Cin).astype(f32)
    dw_w2d = dw_w.reshape(C, K * K).astype(f32)
    pw_scale = params["pw_scale"].reshape(C, 1).astype(f32)
    pw_bias = params["pw_bias"].reshape(C, 1).astype(f32)
    dw_scale = params["dw_scale"].reshape(C, 1).astype(f32)
    dw_bias = params["dw_bias"].reshape(C, 1).astype(f32)

    pad = K // 2
    pade = pad * W + pad
    padl = ((pade + 127) // 128) * 128 if pade else 0    # 128-aligned interior

    # Batch tile: biggest divisor of N that fits the VMEM budget while keeping
    # >= 2 grid steps so v7x's two TensorCores both get work.
    per_img = Cin * HW * x_rows.dtype.itemsize + 2 * C * HW * 4
    budget = 20 << 20                                    # double-buffered target
    bt = 1
    for cand in range(1, N + 1):
        if N % cand:
            continue
        if N >= 2 and (N // cand) < 2:
            continue
        if 2 * cand * per_img > budget:
            continue
        bt = cand

    scratch_bytes = C * (padl + HW + pade) * 4
    param_bytes = (C * Cin + C * K * K + 4 * C) * 4
    # Request only what we use (+headroom); cap below v7x's 64 MiB physical VMEM.
    # TODO(synk): on v5e/v6e (128 MiB) this could go much higher; production
    # shapes on v7x want an H*W grid axis instead of ever-bigger blocks.
    vmem_limit = int(min(48 << 20,
                         max(8 << 20,
                             2 * (bt * per_img + param_bytes)
                             + scratch_bytes + (2 << 20))))

    kern = functools.partial(_ghost_kernel, HW=HW, W=W, Cin=Cin, C=C, K=K,
                             B=bt, padl=padl, use_mxu=use_mxu)
    pw_flat, dw_flat = pl.pallas_call(
        kern,
        out_shape=(jax.ShapeDtypeStruct((N, C, HW), f32),
                   jax.ShapeDtypeStruct((N, C, HW), f32)),
        grid=(N // bt,),
        in_specs=[
            pl.BlockSpec((bt, Cin, HW), lambda n: (n, 0, 0)),
            pl.BlockSpec((C, Cin), lambda n: (0, 0)),
            pl.BlockSpec((C, 1), lambda n: (0, 0)),
            pl.BlockSpec((C, 1), lambda n: (0, 0)),
            pl.BlockSpec((C, K * K), lambda n: (0, 0)),
            pl.BlockSpec((C, 1), lambda n: (0, 0)),
            pl.BlockSpec((C, 1), lambda n: (0, 0)),
        ],
        out_specs=(pl.BlockSpec((bt, C, HW), lambda n: (n, 0, 0)),
                   pl.BlockSpec((bt, C, HW), lambda n: (n, 0, 0))),
        scratch_shapes=[pltpu.VMEM((C, padl + HW + pade), f32)],
        compiler_params=pltpu.CompilerParams(
            # "parallel" only buys concurrency on v7x (2 TCs); harmless elsewhere.
            dimension_semantics=("parallel",),
            vmem_limit_bytes=vmem_limit),
    )(x_rows, pw_w2d, pw_scale, pw_bias, dw_w2d, dw_scale, dw_bias)

    # Kernel outputs are already NCHW (channels-first, H*W flattened): free
    # reshapes, then the cheap channel concat + slice in XLA.
    pw_nchw = pw_flat.reshape(N, C, H, W)
    dw_nchw = dw_flat.reshape(N, C, H, W)
    out = jnp.concatenate([pw_nchw, dw_nchw], axis=1)
    return out[:, :out_channels, :, :]


# ----------------------------------------------------------------------------
# Pure-JAX reference (lax conv) for correctness checking
# ----------------------------------------------------------------------------
def ghost_module_reference(x, params, out_channels, kernel_size, init_channels):
    pw = lax.conv_general_dilated(
        x, params["pw_w"], (1, 1), "VALID",
        dimension_numbers=("NCHW", "OIHW", "NCHW"))
    pw = pw * params["pw_scale"][None, :, None, None] + params["pw_bias"][None, :, None, None]
    pw = jnp.maximum(pw, 0.0)

    p = kernel_size // 2
    dw = lax.conv_general_dilated(
        pw, params["dw_w"], (1, 1), ((p, p), (p, p)),
        dimension_numbers=("NCHW", "OIHW", "NCHW"),
        feature_group_count=init_channels)
    dw = dw * params["dw_scale"][None, :, None, None] + params["dw_bias"][None, :, None, None]
    dw = jnp.maximum(dw, 0.0)

    out = jnp.concatenate([pw, dw], axis=1)
    return out[:, :out_channels, :, :]


if __name__ == "__main__":
    # Module config (small, consistent with GhostModule defaults)
    N, Cin, H, W = 2, 4, 16, 16
    out_channels, kernel_size, ratio = 8, 3, 2
    init_channels = math.ceil(out_channels / ratio)            # 4
    new_channels = init_channels * (ratio - 1)                 # 4

    keys = jax.random.split(jax.random.PRNGKey(0), 16)
    k = iter(keys)

    x = jax.random.normal(next(k), (N, Cin, H, W), jnp.float32)

    # Deterministic synthetic parameters (shapes per the module's __init__)
    pw_w = jax.random.normal(next(k), (init_channels, Cin, 1, 1), jnp.float32) * 0.5
    dw_w = jax.random.normal(next(k), (new_channels, 1, kernel_size, kernel_size),
                             jnp.float32) * 0.5

    # BatchNorm folded to scale/bias: scale = gamma/sqrt(var+eps), bias = beta - mean*scale
    def folded_bn(kg, kb, km, kv, c):
        gamma = 1.0 + 0.1 * jax.random.normal(kg, (c,), jnp.float32)
        beta = 0.1 * jax.random.normal(kb, (c,), jnp.float32)
        mean = 0.1 * jax.random.normal(km, (c,), jnp.float32)
        var = jnp.abs(jax.random.normal(kv, (c,), jnp.float32)) + 0.5
        scale = gamma / jnp.sqrt(var + 1e-5)
        bias = beta - mean * scale
        return scale, bias

    pw_scale, pw_bias = folded_bn(next(k), next(k), next(k), next(k), init_channels)
    dw_scale, dw_bias = folded_bn(next(k), next(k), next(k), next(k), new_channels)

    params = dict(pw_w=pw_w, dw_w=dw_w,
                  pw_scale=pw_scale, pw_bias=pw_bias,
                  dw_scale=dw_scale, dw_bias=dw_bias)

    out = ghost_module_forward(x, params, out_channels, kernel_size)
    out = jax.block_until_ready(out)

    ref = ghost_module_reference(x, params, out_channels, kernel_size, init_channels)
    assert out.shape == (N, out_channels, H, W), out.shape
    max_err = jnp.max(jnp.abs(out - ref))
    assert jnp.allclose(out, ref, atol=1e-2, rtol=1e-2), f"max abs err {max_err}"

    print("KERNEL_OK")
</pallas_src>

<mosaic_0001>
module attributes {stable_mosaic.version = 11 : i64} {
  func.func @_ghost_kernel(%arg0: i32, %arg1: memref<1x4x256xf32, #tpu.memory_space<vmem>>, %arg2: memref<4x4xf32, #tpu.memory_space<vmem>>, %arg3: memref<4x1xf32, #tpu.memory_space<vmem>>, %arg4: memref<4x1xf32, #tpu.memory_space<vmem>>, %arg5: memref<4x9xf32, #tpu.memory_space<vmem>>, %arg6: memref<4x1xf32, #tpu.memory_space<vmem>>, %arg7: memref<4x1xf32, #tpu.memory_space<vmem>>, %arg8: memref<1x4x256xf32, #tpu.memory_space<vmem>>, %arg9: memref<1x4x256xf32, #tpu.memory_space<vmem>>, %arg10: memref<4x401xf32, #tpu.memory_space<vmem>>) attributes {dimension_semantics = [#tpu.dimension_semantics<parallel>], iteration_bounds = array<i64: 2>, scalar_prefetch = 0 : i64, scratch_operands = 1 : i64, tpu.core_type = #tpu.core_type<tc>, window_params = [{transform_indices = @transform_0, window_bounds = array<i64: 1, 4, 256>}, {pipeline_mode = #tpu.pipeline_mode<synchronous>, transform_indices = @transform_1, window_bounds = array<i64: 4, 4>}, {pipeline_mode = #tpu.pipeline_mode<synchronous>, transform_indices = @transform_2, window_bounds = array<i64: 4, 1>}, {pipeline_mode = #tpu.pipeline_mode<synchronous>, transform_indices = @transform_3, window_bounds = array<i64: 4, 1>}, {pipeline_mode = #tpu.pipeline_mode<synchronous>, transform_indices = @transform_4, window_bounds = array<i64: 4, 9>}, {pipeline_mode = #tpu.pipeline_mode<synchronous>, transform_indices = @transform_5, window_bounds = array<i64: 4, 1>}, {pipeline_mode = #tpu.pipeline_mode<synchronous>, transform_indices = @transform_6, window_bounds = array<i64: 4, 1>}, {transform_indices = @transform_7, window_bounds = array<i64: 1, 4, 256>}, {transform_indices = @transform_8, window_bounds = array<i64: 1, 4, 256>}]} {
    %cst = arith.constant 0.000000e+00 : f32
    %0 = vector.broadcast %cst : f32 to vector<4x128xf32>
    %c0 = arith.constant 0 : index
    %c0_0 = arith.constant 0 : index
    %1 = vector.load %arg10[%c0, %c0_0] : memref<4x401xf32, #tpu.memory_space<vmem>>, vector<4x128xf32>
    tpu.vector_store %arg10[%c0, %c0_0], %0 {strides = array<i32>} : memref<4x401xf32, #tpu.memory_space<vmem>>, vector<4x128xf32>,
    %cst_1 = arith.constant 0.000000e+00 : f32
    %2 = vector.broadcast %cst_1 : f32 to vector<4x17xf32>
    %c0_2 = arith.constant 0 : index
    %c384 = arith.constant 384 : index
    %3 = vector.load %arg10[%c0_2, %c384] : memref<4x401xf32, #tpu.memory_space<vmem>>, vector<4x17xf32>
    tpu.vector_store %arg10[%c0_2, %c384], %2 {strides = array<i32>} : memref<4x401xf32, #tpu.memory_space<vmem>>, vector<4x17xf32>,
    %c0_3 = arith.constant 0 : index
    %c0_4 = arith.constant 0 : index
    %4 = vector.load %arg2[%c0_3, %c0_4] : memref<4x4xf32, #tpu.memory_space<vmem>>, vector<4x4xf32>
    %c0_5 = arith.constant 0 : index
    %c0_6 = arith.constant 0 : index
    %5 = vector.load %arg3[%c0_5, %c0_6] : memref<4x1xf32, #tpu.memory_space<vmem>>, vector<4x1xf32>
    %c0_7 = arith.constant 0 : index
    %c0_8 = arith.constant 0 : index
    %6 = vector.load %arg4[%c0_7, %c0_8] : memref<4x1xf32, #tpu.memory_space<vmem>>, vector<4x1xf32>
    %c0_9 = arith.constant 0 : index
    %c0_10 = arith.constant 0 : index
    %7 = vector.load %arg5[%c0_9, %c0_10] : memref<4x9xf32, #tpu.memory_space<vmem>>, vector<4x9xf32>
    %c0_11 = arith.constant 0 : index
    %c0_12 = arith.constant 0 : index
    %8 = vector.load %arg6[%c0_11, %c0_12] : memref<4x1xf32, #tpu.memory_space<vmem>>, vector<4x1xf32>
    %c0_13 = arith.constant 0 : index
    %c0_14 = arith.constant 0 : index
    %9 = vector.load %arg7[%c0_13, %c0_14] : memref<4x1xf32, #tpu.memory_space<vmem>>, vector<4x1xf32>
    %10 = tpu.iota {dimensions = array<i32: 1>} : vector<1x256xi32>
    %c16_i32 = arith.constant 16 : i32
    %c0_i32 = arith.constant 0 : i32
    %11 = arith.cmpi eq, %c16_i32, %c0_i32 : i32
    %c1_i32 = arith.constant 1 : i32
    %12 = arith.select %11, %c1_i32, %c16_i32 : i32
    %13 = vector.broadcast %12 : i32 to vector<1x256xi32>
    %14 = arith.remsi %10, %13 : vector<1x256xi32>
    %c0_i32_15 = arith.constant 0 : i32
    %15 = vector.broadcast %c0_i32_15 : i32 to vector<1x256xi32>
    %16 = arith.cmpi ne, %14, %15 : vector<1x256xi32>
    %c0_i32_16 = arith.constant 0 : i32
    %17 = vector.broadcast %c0_i32_16 : i32 to vector<1x256xi32>
    %18 = arith.cmpi slt, %14, %17 : vector<1x256xi32>
    %c0_i32_17 = arith.constant 0 : i32
    %19 = arith.cmpi slt, %12, %c0_i32_17 : i32
    %20 = vector.broadcast %19 : i1 to vector<1x256xi1>
    %21 = vector.broadcast %20 : vector<1x256xi1> to vector<1x256xi1>
    %22 = arith.xori %18, %21 : vector<1x256xi1>
    %23 = arith.andi %22, %16 : vector<1x256xi1>
    %24 = vector.broadcast %12 : i32 to vector<1x256xi32>
    %25 = arith.addi %14, %24 : vector<1x256xi32>
    %26 = arith.select %23, %25, %14 : vector<1x256xi1>, vector<1x256xi32>
    %c-1_i32 = arith.constant -1 : i32
    %27 = vector.broadcast %c-1_i32 : i32 to vector<1x256xi32>
    %28 = arith.addi %26, %27 : vector<1x256xi32>
    %c0_i32_18 = arith.constant 0 : i32
    %29 = vector.broadcast %c0_i32_18 : i32 to vector<1x256xi32>
    %30 = arith.cmpi sge, %28, %29 : vector<1x256xi32>
    %c-1_i32_19 = arith.constant -1 : i32
    %31 = vector.broadcast %c-1_i32_19 : i32 to vector<1x256xi32>
    %32 = arith.addi %26, %31 : vector<1x256xi32>
    %c16_i32_20 = arith.constant 16 : i32
    %33 = vector.broadcast %c16_i32_20 : i32 to vector<1x256xi32>
    %34 = arith.cmpi slt, %32, %33 : vector<1x256xi32>
    %35 = arith.andi %30, %34 : vector<1x256xi1>
    %36 = arith.extui %35 : vector<1x256xi1> to vector<1x256xi32>
    %37 = arith.sitofp %36 : vector<1x256xi32> to vector<1x256xf32>
    %c1_i32_21 = arith.constant 1 : i32
    %38 = vector.broadcast %c1_i32_21 : i32 to vector<1x256xi32>
    %39 = arith.addi %26, %38 : vector<1x256xi32>
    %c0_i32_22 = arith.constant 0 : i32
    %40 = vector.broadcast %c0_i32_22 : i32 to vector<1x256xi32>
    %41 = arith.cmpi sge, %39, %40 : vector<1x256xi32>
    %c1_i32_23 = arith.constant 1 : i32
    %42 = vector.broadcast %c1_i32_23 : i32 to vector<1x256xi32>
    %43 = arith.addi %26, %42 : vector<1x256xi32>
    %c16_i32_24 = arith.constant 16 : i32
    %44 = vector.broadcast %c16_i32_24 : i32 to vector<1x256xi32>
    %45 = arith.cmpi slt, %43, %44 : vector<1x256xi32>
    %46 = arith.andi %41, %45 : vector<1x256xi1>
    %47 = arith.extui %46 : vector<1x256xi1> to vector<1x256xi32>
    %48 = arith.sitofp %47 : vector<1x256xi32> to vector<1x256xf32>
    %c0_25 = arith.constant 0 : index
    %c0_26 = arith.constant 0 : index
    %c0_27 = arith.constant 0 : index
    %49 = vector.load %arg1[%c0_25, %c0_26, %c0_27] : memref<1x4x256xf32, #tpu.memory_space<vmem>>, vector<1x4x256xf32>
    %50 = vector.shape_cast %49 : vector<1x4x256xf32> to vector<4x256xf32>
    %cst_28 = arith.constant 0.000000e+00 : f32
    %51 = vector.broadcast %cst_28 : f32 to vector<4x256xf32>
    %52 = vector.extract_strided_slice %4 {offsets = [0, 0], sizes = [4, 1], strides = [1, 1]} : vector<4x4xf32> to vector<4x1xf32>
    %53 = vector.extract_strided_slice %50 {offsets = [0, 0], sizes = [1, 256], strides = [1, 1]} : vector<4x256xf32> to vector<1x256xf32>
    %54 = vector.broadcast %52 : vector<4x1xf32> to vector<4x256xf32>
    %55 = vector.broadcast %53 : vector<1x256xf32> to vector<4x256xf32>
    %56 = arith.mulf %54, %55 : vector<4x256xf32>
    %57 = arith.addf %51, %56 : vector<4x256xf32>
    %58 = vector.extract_strided_slice %4 {offsets = [0, 1], sizes = [4, 1], strides = [1, 1]} : vector<4x4xf32> to vector<4x1xf32>
    %59 = vector.extract_strided_slice %50 {offsets = [1, 0], sizes = [1, 256], strides = [1, 1]} : vector<4x256xf32> to vector<1x256xf32>
    %60 = vector.broadcast %58 : vector<4x1xf32> to vector<4x256xf32>
    %61 = vector.broadcast %59 : vector<1x256xf32> to vector<4x256xf32>
    %62 = arith.mulf %60, %61 : vector<4x256xf32>
    %63 = arith.addf %57, %62 : vector<4x256xf32>
    %64 = vector.extract_strided_slice %4 {offsets = [0, 2], sizes = [4, 1], strides = [1, 1]} : vector<4x4xf32> to vector<4x1xf32>
    %65 = vector.extract_strided_slice %50 {offsets = [2, 0], sizes = [1, 256], strides = [1, 1]} : vector<4x256xf32> to vector<1x256xf32>
    %66 = vector.broadcast %64 : vector<4x1xf32> to vector<4x256xf32>
    %67 = vector.broadcast %65 : vector<1x256xf32> to vector<4x256xf32>
    %68 = arith.mulf %66, %67 : vector<4x256xf32>
    %69 = arith.addf %63, %68 : vector<4x256xf32>
    %70 = vector.extract_strided_slice %4 {offsets = [0, 3], sizes = [4, 1], strides = [1, 1]} : vector<4x4xf32> to vector<4x1xf32>
    %71 = vector.extract_strided_slice %50 {offsets = [3, 0], sizes = [1, 256], strides = [1, 1]} : vector<4x256xf32> to vector<1x256xf32>
    %72 = vector.broadcast %70 : vector<4x1xf32> to vector<4x256xf32>
    %73 = vector.broadcast %71 : vector<1x256xf32> to vector<4x256xf32>
    %74 = arith.mulf %72, %73 : vector<4x256xf32>
    %75 = arith.addf %69, %74 : vector<4x256xf32>
    %76 = vector.broadcast %5 : vector<4x1xf32> to vector<4x256xf32>
    %77 = arith.mulf %75, %76 : vector<4x256xf32>
    %78 = vector.broadcast %6 : vector<4x1xf32> to vector<4x256xf32>
    %79 = arith.addf %77, %78 : vector<4x256xf32>
    %cst_29 = arith.constant 0.000000e+00 : f32
    %80 = vector.broadcast %cst_29 : f32 to vector<4x256xf32>
    %81 = arith.maximumf %79, %80 : vector<4x256xf32>
    %c0_30 = arith.constant 0 : index
    %c0_31 = arith.constant 0 : index
    %c0_32 = arith.constant 0 : index
    %82 = vector.load %arg8[%c0_30, %c0_31, %c0_32] : memref<1x4x256xf32, #tpu.memory_space<vmem>>, vector<1x4x256xf32>
    %83 = vector.shape_cast %82 : vector<1x4x256xf32> to vector<4x256xf32>
    %84 = vector.shape_cast %81 : vector<4x256xf32> to vector<1x4x256xf32>
    tpu.vector_store %arg8[%c0_30, %c0_31, %c0_32], %84 {strides = array<i32>} : memref<1x4x256xf32, #tpu.memory_space<vmem>>, vector<1x4x256xf32>,
    %c0_33 = arith.constant 0 : index
    %c128 = arith.constant 128 : index
    %85 = vector.load %arg10[%c0_33, %c128] : memref<4x401xf32, #tpu.memory_space<vmem>>, vector<4x256xf32>
    tpu.vector_store %arg10[%c0_33, %c128], %81 {strides = array<i32>} : memref<4x401xf32, #tpu.memory_space<vmem>>, vector<4x256xf32>,
    %cst_34 = arith.constant 0.000000e+00 : f32
    %86 = vector.broadcast %cst_34 : f32 to vector<4x256xf32>
    %c0_35 = arith.constant 0 : index
    %c111 = arith.constant 111 : index
    %87 = vector.load %arg10[%c0_35, %c111] : memref<4x401xf32, #tpu.memory_space<vmem>>, vector<4x256xf32>
    %88 = vector.broadcast %37 : vector<1x256xf32> to vector<4x256xf32>
    %89 = arith.mulf %87, %88 : vector<4x256xf32>
    %90 = vector.extract_strided_slice %7 {offsets = [0, 0], sizes = [4, 1], strides = [1, 1]} : vector<4x9xf32> to vector<4x1xf32>
    %91 = vector.broadcast %90 : vector<4x1xf32> to vector<4x256xf32>
    %92 = arith.mulf %89, %91 : vector<4x256xf32>
    %93 = arith.addf %86, %92 : vector<4x256xf32>
    %c0_36 = arith.constant 0 : index
    %c112 = arith.constant 112 : index
    %94 = vector.load %arg10[%c0_36, %c112] : memref<4x401xf32, #tpu.memory_space<vmem>>, vector<4x256xf32>
    %95 = vector.extract_strided_slice %7 {offsets = [0, 1], sizes = [4, 1], strides = [1, 1]} : vector<4x9xf32> to vector<4x1xf32>
    %96 = vector.broadcast %95 : vector<4x1xf32> to vector<4x256xf32>
    %97 = arith.mulf %94, %96 : vector<4x256xf32>
    %98 = arith.addf %93, %97 : vector<4x256xf32>
    %c0_37 = arith.constant 0 : index
    %c113 = arith.constant 113 : index
    %99 = vector.load %arg10[%c0_37, %c113] : memref<4x401xf32, #tpu.memory_space<vmem>>, vector<4x256xf32>
    %100 = vector.broadcast %48 : vector<1x256xf32> to vector<4x256xf32>
    %101 = arith.mulf %99, %100 : vector<4x256xf32>
    %102 = vector.extract_strided_slice %7 {offsets = [0, 2], sizes = [4, 1], strides = [1, 1]} : vector<4x9xf32> to vector<4x1xf32>
    %103 = vector.broadcast %102 : vector<4x1xf32> to vector<4x256xf32>
    %104 = arith.mulf %101, %103 : vector<4x256xf32>
    %105 = arith.addf %98, %104 : vector<4x256xf32>
    %c0_38 = arith.constant 0 : index
    %c127 = arith.constant 127 : index
    %106 = vector.load %arg10[%c0_38, %c127] : memref<4x401xf32, #tpu.memory_space<vmem>>, vector<4x256xf32>
    %107 = vector.broadcast %37 : vector<1x256xf32> to vector<4x256xf32>
    %108 = arith.mulf %106, %107 : vector<4x256xf32>
    %109 = vector.extract_strided_slice %7 {offsets = [0, 3], sizes = [4, 1], strides = [1, 1]} : vector<4x9xf32> to vector<4x1xf32>
    %110 = vector.broadcast %109 : vector<4x1xf32> to vector<4x256xf32>
    %111 = arith.mulf %108, %110 : vector<4x256xf32>
    %112 = arith.addf %105, %111 : vector<4x256xf32>
    %c0_39 = arith.constant 0 : index
    %c128_40 = arith.constant 128 : index
    %113 = vector.load %arg10[%c0_39, %c128_40] : memref<4x401xf32, #tpu.memory_space<vmem>>, vector<4x256xf32>
    %114 = vector.extract_strided_slice %7 {offsets = [0, 4], sizes = [4, 1], strides = [1, 1]} : vector<4x9xf32> to vector<4x1xf32>
    %115 = vector.broadcast %114 : vector<4x1xf32> to vector<4x256xf32>
    %116 = arith.mulf %113, %115 : vector<4x256xf32>
    %117 = arith.addf %112, %116 : vector<4x256xf32>
    %c0_41 = arith.constant 0 : index
    %c129 = arith.constant 129 : index
    %118 = vector.load %arg10[%c0_41, %c129] : memref<4x401xf32, #tpu.memory_space<vmem>>, vector<4x256xf32>
    %119 = vector.broadcast %48 : vector<1x256xf32> to vector<4x256xf32>
    %120 = arith.mulf %118, %119 : vector<4x256xf32>
    %121 = vector.extract_strided_slice %7 {offsets = [0, 5], sizes = [4, 1], strides = [1, 1]} : vector<4x9xf32> to vector<4x1xf32>
    %122 = vector.broadcast %121 : vector<4x1xf32> to vector<4x256xf32>
    %123 = arith.mulf %120, %122 : vector<4x256xf32>
    %124 = arith.addf %117, %123 : vector<4x256xf32>
    %c0_42 = arith.constant 0 : index
    %c143 = arith.constant 143 : index
    %125 = vector.load %arg10[%c0_42, %c143] : memref<4x401xf32, #tpu.memory_space<vmem>>, vector<4x256xf32>
    %126 = vector.broadcast %37 : vector<1x256xf32> to vector<4x256xf32>
    %127 = arith.mulf %125, %126 : vector<4x256xf32>
    %128 = vector.extract_strided_slice %7 {offsets = [0, 6], sizes = [4, 1], strides = [1, 1]} : vector<4x9xf32> to vector<4x1xf32>
    %129 = vector.broadcast %128 : vector<4x1xf32> to vector<4x256xf32>
    %130 = arith.mulf %127, %129 : vector<4x256xf32>
    %131 = arith.addf %124, %130 : vector<4x256xf32>
    %c0_43 = arith.constant 0 : index
    %c144 = arith.constant 144 : index
    %132 = vector.load %arg10[%c0_43, %c144] : memref<4x401xf32, #tpu.memory_space<vmem>>, vector<4x256xf32>
    %133 = vector.extract_strided_slice %7 {offsets = [0, 7], sizes = [4, 1], strides = [1, 1]} : vector<4x9xf32> to vector<4x1xf32>
    %134 = vector.broadcast %133 : vector<4x1xf32> to vector<4x256xf32>
    %135 = arith.mulf %132, %134 : vector<4x256xf32>
    %136 = arith.addf %131, %135 : vector<4x256xf32>
    %c0_44 = arith.constant 0 : index
    %c145 = arith.constant 145 : index
    %137 = vector.load %arg10[%c0_44, %c145] : memref<4x401xf32, #tpu.memory_space<vmem>>, vector<4x256xf32>
    %138 = vector.broadcast %48 : vector<1x256xf32> to vector<4x256xf32>
    %139 = arith.mulf %137, %138 : vector<4x256xf32>
    %140 = vector.extract_strided_slice %7 {offsets = [0, 8], sizes = [4, 1], strides = [1, 1]} : vector<4x9xf32> to vector<4x1xf32>
    %141 = vector.broadcast %140 : vector<4x1xf32> to vector<4x256xf32>
    %142 = arith.mulf %139, %141 : vector<4x256xf32>
    %143 = arith.addf %136, %142 : vector<4x256xf32>
    %144 = vector.broadcast %8 : vector<4x1xf32> to vector<4x256xf32>
    %145 = arith.mulf %143, %144 : vector<4x256xf32>
    %146 = vector.broadcast %9 : vector<4x1xf32> to vector<4x256xf32>
    %147 = arith.addf %145, %146 : vector<4x256xf32>
    %cst_45 = arith.constant 0.000000e+00 : f32
    %148 = vector.broadcast %cst_45 : f32 to vector<4x256xf32>
    %149 = arith.maximumf %147, %148 : vector<4x256xf32>
    %c0_46 = arith.constant 0 : index
    %c0_47 = arith.constant 0 : index
    %c0_48 = arith.constant 0 : index
    %150 = vector.load %arg9[%c0_46, %c0_47, %c0_48] : memref<1x4x256xf32, #tpu.memory_space<vmem>>, vector<1x4x256xf32>
    %151 = vector.shape_cast %150 : vector<1x4x256xf32> to vector<4x256xf32>
    %152 = vector.shape_cast %149 : vector<4x256xf32> to vector<1x4x256xf32>
    tpu.vector_store %arg9[%c0_46, %c0_47, %c0_48], %152 {strides = array<i32>} : memref<1x4x256xf32, #tpu.memory_space<vmem>>, vector<1x4x256xf32>,
    return
  }
  func.func @transform_0(%arg0: i32) -> (i32, i32, i32) {
    %c0_i32 = arith.constant 0 : i32
    %c0_i32_0 = arith.constant 0 : i32
    %c0_i32_1 = arith.constant 0 : i32
    return %arg0, %c0_i32, %c0_i32_0 : i32, i32, i32
  }
  func.func @transform_1(%arg0: i32) -> (i32, i32) {
    %c0_i32 = arith.constant 0 : i32
    %c0_i32_0 = arith.constant 0 : i32
    %c0_i32_1 = arith.constant 0 : i32
    return %c0_i32, %c0_i32_0 : i32, i32
  }
  func.func @transform_2(%arg0: i32) -> (i32, i32) {
    %c0_i32 = arith.constant 0 : i32
    %c0_i32_0 = arith.constant 0 : i32
    %c0_i32_1 = arith.constant 0 : i32
    return %c0_i32, %c0_i32_0 : i32, i32
  }
  func.func @transform_3(%arg0: i32) -> (i32, i32) {
    %c0_i32 = arith.constant 0 : i32
    %c0_i32_0 = arith.constant 0 : i32
    %c0_i32_1 = arith.constant 0 : i32
    return %c0_i32, %c0_i32_0 : i32, i32
  }
  func.func @transform_4(%arg0: i32) -> (i32, i32) {
    %c0_i32 = arith.constant 0 : i32
    %c0_i32_0 = arith.constant 0 : i32
    %c0_i32_1 = arith.constant 0 : i32
    return %c0_i32, %c0_i32_0 : i32, i32
  }
  func.func @transform_5(%arg0: i32) -> (i32, i32) {
    %c0_i32 = arith.constant 0 : i32
    %c0_i32_0 = arith.constant 0 : i32
    %c0_i32_1 = arith.constant 0 : i32
    return %c0_i32, %c0_i32_0 : i32, i32
  }
  func.func @transform_6(%arg0: i32) -> (i32, i32) {
    %c0_i32 = arith.constant 0 : i32
    %c0_i32_0 = arith.constant 0 : i32
    %c0_i32_1 = arith.constant 0 : i32
    return %c0_i32, %c0_i32_0 : i32, i32
  }
  func.func @transform_7(%arg0: i32) -> (i32, i32, i32) {
    %c0_i32 = arith.constant 0 : i32
    %c0_i32_0 = arith.constant 0 : i32
    %c0_i32_1 = arith.constant 0 : i32
    return %arg0, %c0_i32, %c0_i32_0 : i32, i32, i32
  }
  func.func @transform_8(%arg0: i32) -> (i32, i32, i32) {
    %c0_i32 = arith.constant 0 : i32
    %c0_i32_0 = arith.constant 0 : i32
    %c0_i32_1 = arith.constant 0 : i32
    return %arg0, %c0_i32, %c0_i32_0 : i32, i32, i32
  }
}

</mosaic_0001>

<bundles_post_ra>
// kernel: tpu_custom_call.1
= control target key start
LH: loop header
LB: loop body
LE: loop exit
PB: predicated region body
PF: predicated region fallthrough
CT: control target
= control target key end

     0   :  { %14 = vsyncpa [#allocation4], 0  ;;  %s1464_s0 = inlined_call_operand.vmem [shape: f32[2,4,256], index: 0, kind: input, shape index: {}]   ;;  %s1465_s1 = inlined_call_operand.vmem [shape: f32[4,4], index: 1, kind: input, shape index: {}]   ;;  %s1466_s2 = inlined_call_operand.vmem [shape: f32[4,1], index: 2, kind: input, shape index: {}]   ;;  %s1467_s3 = inlined_call_operand.vmem [shape: f32[4,1], index: 3, kind: input, shape index: {}]   ;;  %s1468_s4 = inlined_call_operand.vmem [shape: f32[4,9], index: 4, kind: input, shape index: {}]   ;;  %s1469_s5 = inlined_call_operand.vmem [shape: f32[4,1], index: 5, kind: input, shape index: {}]   ;;  %s1470_s6 = inlined_call_operand.vmem [shape: f32[4,1], index: 6, kind: input, shape index: {}]   ;;  %s1471_s7 = inlined_call_operand.hbm [shape: f32[2,4,256], index: 7, kind: output, shape index: {0}]   ;;  %s1472_s8 = inlined_call_operand.hbm [shape: f32[2,4,256], index: 8, kind: output, shape index: {1}]  }
   0x1   :  { %16 = vsyncpa [#allocation4 + $0x1], 0 }
   0x2   :  { %17 = vsyncpa [#allocation6], 0 }
   0x3   :  { %19 = vsyncpa [#allocation6 + $0x1], 0  ;;  %s1241_s27 = smov 0   ;;  %s1243_s28 = smov 0  }
   0x4   :  { %s1245_s29 = smov 0   ;;  %s1247_s30 = smov 0  }
   0x5 LB: > { %s1262_s9 = sadd.s32 4294967295, %s1169_s30   ;;  %s973_s10 = sadd.s32 4294967294, %s1169_s30   ;;  %s1169_s30 = sphi %s1247_s30, %s1485_s30   ;;  %s1165_s29 = sphi %s1245_s29, %s1484_s29   ;;  %s1161_s28 = sphi %s1243_s28, %s1483_s28   ;;  %s1157_s27 = sphi %s1241_s27, %s1482_s27  }
   0x6   : > { %s1266_s11 = sadd.s32 1, %s1169_s30   ;;  %s184_s12 = sadd.s32 1, %s1165_s29 }
   0x7   : > { %s181_s13 = ssub.s32 %s1169_s30, %s1266_s11  ;;  %p194_p0 = scmp.ne.s32.totalorder %s1165_s29, %s1161_s28 }
   0x8   : > { %p182_p1 = scmp.eq.s32.totalorder %s181_s13, 0  ;;  %p195_p2 = scmp.eq.s32.totalorder %s1262_s9, 1 }
   0x9   : > { %p200_p3 = scmp.ne.s32.totalorder %s1161_s28, %s1157_s27  ;;  %p201_p4 = scmp.eq.s32.totalorder %s973_s10, 1 }
   0xa   : > { %s1277_s14 = scalar_select %p182_p1, %s1165_s29, %s184_s12  }
   0xb   : > { %p1279_p5 = por %p195_p2, %p194_p0  ;;  %p1283_p6 = por %p201_p4, %p200_p3 }
   0xc   : > { %p976_p7 = scmp.ge.s32.totalorder %s1169_s30, 1  ;;  %p271_p8 = scmp.lt.s32.totalorder %s1169_s30, 3 }
   0xe   : > { %p272_p9 = pnand %p976_p7, %p271_p8 }
   0xf   : > { %s1176_s25 = smov (!%p272_p9), 113   ;;  %s1178_s26 = smov (!%p272_p9), 127  }
  0x10   : > { %275 = sbr.rel (%p272_p9) target bundleno = 494 (0x1ee), region = 48  ;;  %s1179_s10 = smov (!%p272_p9), 15  }
  0x11   : > { %s1182_s12 = smov (!%p272_p9), 1   ;;  %s1183_s13 = smov (!%p272_p9), 111  }
  0x12   : > { %s1475_s17 = smov (!%p272_p9), 17   ;;  %p310_p10 = scmp.lt.s32.totalorder (!%p272_p9), %s1262_s9, 1 }
  0x13   : > { %s1327_s23 = sand.u32 (!%p272_p9), 1, %s1161_s28  }
  0x14   : > { %s1473_s24 = sshll.u32 (!%p272_p9), %s1327_s23, 3  ;;  %s849_s20 = scalar_lea.sflag (!%p272_p9), [#allocation4], %s1327_s23 }
  0x15   : > { %v318_v0 = vld [vmem:[%s1465_s1] sm:$0xf]  ;;  %v1171_v1 = vmov 2   ;;  %v1172_v2 = vmov 0   ;;  %vm316_vm0 = vcmask 134144   ;;  %v324_v3 = vlaneseq  ;;  %s311_s18 = scalar_select %p310_p10, %s1262_s9, 1 }
  0x16   : > { %1065 = vset.pattern.permute.xlu1 %v1171_v1  ;;  %1063 = vset.pattern.permute.xlu0 %v1172_v2  ;;  %v1173_v4 = vmov 0.0   ;;  %v1174_v8 = vmov 3   ;;  %v1175_v9 = vmov 1   ;;  %v319_v13 = vld [vmem:[%s1466_s2] sm:$0xf]  ;;  %v1177_v24 = vmov 5  }
  0x17   : > { %431 = vperm.xlu1 %1065, %v318_v0   ;;  %378 = vperm.xlu0 %1063, %v318_v0   ;;  %315 = vst [vmem:[#allocation2] sm:$0xf] %v1173_v4  ;;  %317 = vst.msk [vmem:[#allocation2 + $0xc] sm:$0xf] %vm316_vm0, %v1173_v4  ;;  %v325_v5 = vand.u32 127, %v324_v3  ;;  %v1180_v25 = vmov 8  }
  0x18   : > { %v320_v14 = vld [vmem:[%s1467_s3] sm:$0xf]  ;;  %v1181_v26 = vmov 4   ;;  %v1184_v27 = vmov 6   ;;  %v1185_v28 = vmov 7   ;;  %s993_s19 = sshll.u32 %s311_s18, 3 }
  0x19   : > { %v326_v6 = vadd.s32 128, %v325_v5  ;;  %v331_v7 = vand.u32 15, %v325_v5  ;;  %v321_v22 = vld [vmem:[%s1468_s4] sm:$0xf]  ;;  %v1313_v29 = vshrl.u32 %v324_v3, 7  ;;  %s314_s22 = scalar_lea.vmem %s1464_s0, %s993_s19  ;;  %vm571_vm5 = vcmask 924672  }
  0x1a   : > { %v375_v34 = vld [vmem:[%s314_s22] sm:$0xff]  ;;  %vm559_vm6 = vcmask 1039360   ;;  %vm670_vm7 = vcmask 7168   ;;  %s1190_s18 = smov 95   ;;  %vm708_vm8 = vcmask 121856   ;;  %vm773_vm9 = vcmask 138240  }
  0x1b   : > { %1066 = vset.pattern.permute.xlu1 %v1174_v8  ;;  %1064 = vset.pattern.permute.xlu0 %v1175_v9  ;;  %v338_v10 = vand.u32 15, %v326_v6  ;;  %v363_v11 = vadd.s32 1, %v331_v7  ;;  %v351_v12 = vadd.s32 4294967295, %v331_v7  ;;  %v384_v30 = vsub.s32 0, %v1313_v29  ;;  %s1194_s22 = smov [#allocation3]  }
  0x1c   : > { %457 = vperm.xlu1 %1066, %v318_v0   ;;  %405 = vperm.xlu0 %1064, %v318_v0   ;;  %v388_v31 = vsub.s32 4, %v1313_v29  ;;  %v410_v32 = vsub.s32 1, %v1313_v29  ;;  %v414_v33 = vsub.s32 5, %v1313_v29  ;;  %v436_v35 = vsub.s32 2, %v1313_v29 }
  0x1d   : > { %v364_v15 = vadd.s32 1, %v338_v10  ;;  %vm367_vm1 = vcmp.lt.s32.totalorder %v363_v11, 16  ;;  %v352_v16 = vadd.s32 4294967295, %v338_v10  ;;  %vm353_vm2 = vcmp.ge.s32.totalorder %v351_v12, 0 }
  0x1e   : > { %v983_v17 = vsel %vm367_vm1, 1.0, %v1173_v4  ;;  %v981_v20 = vsel %vm353_vm2, 1.0, %v1173_v4  ;;  %v440_v36 = vsub.s32 6, %v1313_v29  ;;  %v385_v37 = vrot.slane %v375_v34, %v384_v30 }
  0x1f   : > { %vm368_vm3 = vcmp.lt.s32.totalorder %v364_v15, 16  ;;  %vm354_vm4 = vcmp.ge.s32.totalorder %v352_v16, 0  ;;  %v389_v38 = vrot.slane %v375_v34, %v388_v31  ;;  %v462_v39 = vsub.s32 3, %v1313_v29 }
  0x20   : > { %1067 = vset.pattern.permute.xlu1 %v1172_v2  ;;  %1068 = vset.pattern.permute.xlu0 %v1172_v2  ;;  %v984_v18 = vsel %vm368_vm3, 1.0, %v1173_v4  ;;  %v982_v21 = vsel %vm354_vm4, 1.0, %v1173_v4  ;;  %v466_v40 = vsub.s32 7, %v1313_v29  ;;  %v411_v41 = vrot.slane %v375_v34, %v410_v32 }
  0x21   : > { %484 = vperm.xlu1 %1067, %v319_v13   ;;  %491 = vperm.xlu0 %1068, %v320_v14   ;;  %v567_v19 = vcombine.low %v983_v17, %v984_v18  ;;  %v508_v23 = vcombine.low %v981_v20, %v982_v21  ;;  %v415_v42 = vrot.slane %v375_v34, %v414_v33  ;;  %v1187_v16 = vmov 839922192  }
  0x22   : > { %v437_v44 = vrot.slane %v375_v34, %v436_v35  ;;  %v441_v45 = vrot.slane %v375_v34, %v440_v36  ;;  %v395_v47 = vrot.slane %v385_v37, %v384_v30  ;;  %v399_v48 = vrot.slane %v389_v38, %v384_v30  ;;  %v666_v38 = vld [vmem:[#allocation2 + $0xc] sm:$0xf] }
  0x23   : > { %v463_v49 = vrot.slane %v375_v34, %v462_v39  ;;  %v467_v50 = vrot.slane %v375_v34, %v466_v40  ;;  %v421_v51 = vrot.slane %v411_v41, %v410_v32  ;;  %v425_v52 = vrot.slane %v415_v42, %v410_v32 }
  0x24   : > { %v447_v53 = vrot.slane %v437_v44, %v436_v35  ;;  %v451_v54 = vrot.slane %v441_v45, %v436_v35  ;;  %v523_v17 = vunpack.c.l.s4 %v1187_v16  ;;  %vm512_vm10 = vcmask 908288  }
  0x25   : > { %1069 = vset.pattern.permute.xlu1 %v1175_v9  ;;  %568 = vrot.lane.b32.xlu0 %v567_v19, %s1176_s25  ;;  %v473_v59 = vrot.slane %v463_v49, %v462_v39  ;;  %v477_v60 = vrot.slane %v467_v50, %v462_v39  ;;  %s1335_s25 = scalar_lea.vmem [#allocation3], %s1473_s24  ;;  %vm557_vm11 = vcmask 1043456   ;;  %vm599_vm12 = vcmask 1031168  }
  0x26   : > { %537 = vperm.xlu1 %1069, %v321_v22   ;;  %1073 = vset.pattern.permute.xlu0 %v1177_v24  ;;  %v524_v21 = vunpack.c.0.s8 %v523_v17  ;;  %vm637_vm13 = vcmask 916480   ;;  %vm696_vm14 = vcmask 900096   ;;  %vm734_vm15 = vcmask 785408   ;;  %s868_s19 = sshll.u32 %s1335_s25, 4  ;;  %s869_s19 = int_to_ptr.vmem [resolvable:$true] %s868_s19 }
  0x27   : > { %vm763_vm0 = vcmask 777216   ;;  %vm799_vm1 = vcmask 769024   ;;  %s1079_s21 = scalar_lea.vmem %s869_s19, 128 }
  0x28   : > { %v1340_v24 = vsub.s32 %v524_v21, %v1313_v29  ;;  %p1080_p11 = scmp.ne.s32.totalorder %s869_s19, %s1079_s21 }
  0x29   : > { %607 = vrot.lane.b32.xlu0 %v508_v23, %s1178_s26 }
  0x2a   : > { %1070 = vset.pattern.permute.xlu1 %v1171_v1  ;;  %p1081_p12 = pnand %p1080_p11, %p1279_p5 }
  0x2b   : > { %578 = vperm.xlu1 %1070, %v321_v22  }
  0x2c   : > { %p1082_p13 = pneg %p1081_p12 }
  0x2d   : > { %677 = vperm.xlu0 %1073, %v321_v22  }
  0x2f   : > { %1071 = vset.pattern.permute.xlu1 %v1174_v8 }
  0x30   : > { %616 = vperm.xlu1 %1071, %v321_v22  }
  0x31   : > { %705 = vrot.lane.b32.xlu0 %v508_v23, %s1179_s10  ;;  %s1188_s10 = smov 126  }
  0x32   : > { %1076 = vset.pattern.permute.xlu0 %v1180_v25 }
  0x34   : > { %1072 = vset.pattern.permute.xlu1 %v1181_v26 }
  0x35   : > { %645 = vperm.xlu1 %1072, %v321_v22   ;;  %780 = vperm.xlu0 %1076, %v321_v22  }
  0x39   : > { %667 = vrot.lane.b32.xlu1 %v567_v19, %s1182_s12  ;;  %509 = vrot.lane.b32.xlu0 %v508_v23, %s1183_s13  ;;  %s1189_s12 = smov 110  }
  0x3a   : > { %1074 = vset.pattern.permute.xlu1 %v1184_v27  ;;  %1078 = vset.pattern.permute.xlu0 %v1172_v2 }
  0x3d   : > { %715 = vperm.xlu1 %1074, %v321_v22  }
  0x41   : > { %1075 = vset.pattern.permute.xlu1 %v1185_v28 }
  0x42   : > { %744 = vperm.xlu1 %1075, %v321_v22  }
  0x46   : > { %770 = vrot.lane.b32.xlu1 %v567_v19, %s1475_s17 }
  0x47   : > { %1077 = vset.pattern.permute.xlu1 %v1172_v2 }
  0x4a   : > { %520 = vperm.xlu1 %1077, %v321_v22  }
  0x92   : > { %v432_v43 = vpop.permute.xlu1 %431  ;;  %v379_v46 = vpop.permute.xlu0 %378 }
  0x93   : > { %v400_v55 = vmul.f32 %v395_v47, %v379_v46  ;;  %v401_v56 = vmul.f32 %v399_v48, %v379_v46  ;;  %v452_v63 = vmul.f32 %v447_v53, %v432_v43  ;;  %v453_v0 = vmul.f32 %v451_v54, %v432_v43  ;;  %v742_v48 = vld [vmem:[#allocation2 + $0xc] sm:$0xf] }
  0x97   : > { %v458_v57 = vpop.permute.xlu1 %457  ;;  %v406_v58 = vpop.permute.xlu0 %405 }
  0x98   : > { %v426_v61 = vmul.f32 %v421_v51, %v406_v58  ;;  %v427_v62 = vmul.f32 %v425_v52, %v406_v58  ;;  %v478_v3 = vmul.f32 %v473_v59, %v458_v57  ;;  %v479_v4 = vmul.f32 %v477_v60, %v458_v57 }
  0x9a   : > { %v428_v1 = vadd.f32 %v426_v61, %v400_v55  ;;  %v429_v2 = vadd.f32 %v427_v62, %v401_v56 }
  0x9c   : > { %v485_v5 = vpop.permute.xlu1 %484  ;;  %v454_v6 = vadd.f32 %v452_v63, %v428_v1  ;;  %v455_v7 = vadd.f32 %v453_v0, %v429_v2  ;;  %v492_v12 = vpop.permute.xlu0 %491  ;;  %v704_v63 = vld [vmem:[#allocation2 + $0xc] sm:$0xf] }
  0x9e   : > { %v480_v8 = vadd.f32 %v478_v3, %v454_v6  ;;  %v481_v9 = vadd.f32 %v479_v4, %v455_v7 }
  0xa0   : > { %v487_v10 = vmul.f32 %v485_v5, %v480_v8  ;;  %v488_v11 = vmul.f32 %v485_v5, %v481_v9  ;;  %v569_v23 = vpop.permute.xlu0 %568 }
  0xa1   : > { %v538_v13 = vpop.permute.xlu1 %537  ;;  %v570_v28 = vrot.slane %v569_v23, 4 }
  0xa2   : > { %v494_v14 = vadd.f32 %v492_v12, %v487_v10  ;;  %v495_v15 = vadd.f32 %v492_v12, %v488_v11  ;;  %v545_v26 = vrot.slane %v538_v13, %v1340_v24 }
  0xa3   : > { %v572_v49 = vsel %vm571_vm5, %v570_v28, %v569_v23 }
  0xa4   : > { %v496_v18 = vmax.f32 %v494_v14, 0.0  ;;  %v497_v19 = vmax.f32 %v495_v15, 0.0  ;;  %v608_v27 = vpop.permute.xlu0 %607  ;;  %v322_v15 = vld [vmem:[%s1469_s5] sm:$0xf] }
  0xa5   : > { %v609_v50 = vrot.slane %v608_v27, 4 }
  0xa6   : > { %v1330_v20 = vcombine.low %v496_v18, %v497_v19  ;;  %v579_v22 = vpop.permute.xlu1 %578  ;;  %v323_v19 = vld [vmem:[%s1470_s6] sm:$0xf] }
  0xa7   : > { %v586_v34 = vrot.slane %v579_v22, %v1340_v24  ;;  %v610_v56 = vsel %vm559_vm6, %v609_v50, %v608_v27 }
  0xa8   : > { %503 = vst [vmem:[#allocation2 + $0x4] sm:$0xff] %v1330_v20  ;;  %502 = vst [vmem:[%s1335_s25] sm:$0xff] %v1330_v20  ;;  %v678_v36 = vpop.permute.xlu0 %677 }
  0xa9   : > { %v685_v29 = vrot.slane %v678_v36, %v1340_v24 }
  0xab   : > { %v617_v25 = vpop.permute.xlu1 %616 }
  0xac   : > { %v706_v58 = vpop.permute.xlu0 %705  ;;  %v624_v62 = vrot.slane %v617_v25, %v1340_v24 }
  0xad   : > { %v707_v0 = vrot.slane %v706_v58, 4 }
  0xaf   : > { %v535_v30 = vld [vmem:[#allocation2 + $0x8] sm:$0xf]  ;;  %v1347_v43 = vld [vmem:[#allocation2] sm:$0xff]  ;;  %v713_v5 = vmul.f32 %v707_v0, %v704_v63  ;;  %v709_v7 = vsel %vm708_vm8, %v707_v0, %v706_v58 }
  0xb0   : > { %v548_v31 = vmul.f32 %v545_v26, %v535_v30  ;;  %v646_v32 = vpop.permute.xlu1 %645  ;;  %v576_v33 = vmul.f32 %v570_v28, %v535_v30  ;;  %v547_v44 = vmul.f32 %v545_v26, %v1347_v43  ;;  %v575_v52 = vmul.f32 %v572_v49, %v1347_v43  ;;  %v606_v53 = vld [vmem:[#allocation2 + $0x8] sm:$0xf]  ;;  %v781_v13 = vpop.permute.xlu0 %780 }
  0xb1   : > { %v653_v45 = vrot.slane %v646_v32, %v1340_v24  ;;  %v614_v57 = vmul.f32 %v609_v50, %v606_v53  ;;  %v613_v59 = vmul.f32 %v610_v56, %v1347_v43  ;;  %v712_v11 = vmul.f32 %v709_v7, %v1330_v20 }
  0xb2   : > { %553 = vrot.lane.b32.xlu0 %v548_v31, %s1178_s26  ;;  %v589_v35 = vmul.f32 %v586_v34, %v576_v33  ;;  %v588_v60 = vmul.f32 %v586_v34, %v575_v52  ;;  %v788_v16 = vrot.slane %v781_v13, %v1340_v24 }
  0xb3   : > { %v655_v54 = vmul.f32 %v653_v45, %v1330_v20  ;;  %v627_v2 = vmul.f32 %v624_v62, %v614_v57  ;;  %v626_v4 = vmul.f32 %v624_v62, %v613_v59 }
  0xb4   : > { %v668_v37 = vpop.permute.xlu1 %667  ;;  %v510_v23 = vpop.permute.xlu0 %509 }
  0xb5   : > { %v669_v39 = vrot.slane %v668_v37, 4  ;;  %v511_v31 = vrot.slane %v510_v23, 4 }
  0xb6   : > { %594 = vrot.lane.b32.xlu0 %v589_v35, %s1188_s10 }
  0xb7   : > { %v675_v40 = vmul.f32 %v669_v39, %v666_v38  ;;  %v671_v61 = vsel %vm670_vm7, %v669_v39, %v668_v37  ;;  %v513_v36 = vsel %vm512_vm10, %v511_v31, %v510_v23 }
  0xb8   : > { %v716_v41 = vpop.permute.xlu1 %715  ;;  %v674_v3 = vmul.f32 %v671_v61, %v1330_v20 }
  0xb9   : > { %v688_v42 = vmul.f32 %v685_v29, %v675_v40  ;;  %v723_v8 = vrot.slane %v716_v41, %v1340_v24  ;;  %v516_v41 = vmul.f32 %v1347_v43, %v513_v36 }
  0xba   : > { %v687_v9 = vmul.f32 %v685_v29, %v674_v3 }
  0xbb   : > { %693 = vrot.lane.b32.xlu1 %v688_v42, %s1189_s12  ;;  %v726_v10 = vmul.f32 %v723_v8, %v713_v5  ;;  %v725_v14 = vmul.f32 %v723_v8, %v712_v11 }
  0xbd   : > { %v745_v46 = vpop.permute.xlu1 %744 }
  0xbe   : > { %v752_v47 = vrot.slane %v745_v46, %v1340_v24 }
  0xbf   : > { %551 = vrot.lane.b32.xlu1 %v547_v44, %s1178_s26  ;;  %s1191_s26 = smov 112  }
  0xc0   : > { %v754_v51 = vmul.f32 %v752_v47, %v1330_v20  ;;  %v755_v55 = vmul.f32 %v752_v47, %v742_v48 }
  0xc1   : > { %v771_v1 = vpop.permute.xlu1 %770 }
  0xc2   : > { %758 = vrot.lane.b32.xlu0 %v754_v51, %s1190_s18  ;;  %v772_v6 = vrot.slane %v771_v1, 4 }
  0xc3   : > { %657 = vrot.lane.b32.xlu1 %v655_v54, %s1183_s13  ;;  %s1192_s13 = smov 96   ;;  %v505_v54 = vld [vmem:[#allocation2 + $0x8] sm:$0xf] }
  0xc4   : > { %v774_v12 = vsel %vm773_vm9, %v772_v6, %v771_v1  ;;  %v778_v18 = vmul.f32 %v772_v6, %v742_v48  ;;  %v517_v56 = vmul.f32 %v511_v31, %v505_v54 }
  0xc5   : > { %v777_v17 = vmul.f32 %v774_v12, %v1330_v20  ;;  %v521_v25 = vpop.permute.xlu1 %520 }
  0xc6   : > { %760 = vrot.lane.b32.xlu0 %v755_v55, %s1190_s18  ;;  %v791_v22 = vmul.f32 %v788_v16, %v778_v18  ;;  %v528_v38 = vrot.slane %v521_v25, %v1340_v24 }
  0xc7   : > { %592 = vrot.lane.b32.xlu1 %v588_v60, %s1188_s10  ;;  %v790_v21 = vmul.f32 %v788_v16, %v777_v17  ;;  %s1193_s10 = smov 94  }
  0xc8   : > { %v530_v48 = vmul.f32 %v528_v38, %v516_v41  ;;  %v531_v58 = vmul.f32 %v528_v38, %v517_v56 }
  0xca   : > { %632 = vrot.lane.b32.xlu0 %v627_v2, %s1191_s26 }
  0xcb   : > { %630 = vrot.lane.b32.xlu1 %v626_v4, %s1191_s26 }
  0xce   : > { %691 = vrot.lane.b32.xlu0 %v687_v9, %s1189_s12  ;;  %s1474_s12 = sshll.u32 %s1262_s9, 7 }
  0xcf   : > { %731 = vrot.lane.b32.xlu1 %v726_v10, %s1192_s13 }
  0xd2   : > { %729 = vrot.lane.b32.xlu0 %v725_v14, %s1192_s13  ;;  %s1396_s13 = scalar_lea.hbm %s1471_s7, %s1474_s12 }
  0xd3   : > { %808 = vperm.xlu1 %1077, %v322_v15  }
  0xd6   : > { %822 = vperm.xlu0 %1078, %v323_v19  }
  0xd7   : > { %794 = vrot.lane.b32.xlu1 %v790_v21, %s1193_s10 }
  0xdb   : > { %796 = vrot.lane.b32.xlu1 %v791_v22, %s1193_s10  ;;  %s1083_s10 = sshll.u32 %s1194_s22, 4  ;;  %s1084_s10 = int_to_ptr.vmem [resolvable:$false] %s1083_s10 }
  0xdc   : > { %s1085_s24 = scalar_lea.vmem %s1084_s10, 256  ;;  %p1086_p0 = scmp.lt.s32.totalorder %s869_s19, %s1084_s10 }
  0xdd   : > { %p1087_p1 = scmp.lt.s32.totalorder %s1085_s24, %s1079_s21 }
  0xdf   : > { %p1088_p2 = por %p1087_p1, %p1086_p0 }
  0xe1   : > { %p1089_p3 = pnand %p1088_p2, %p1082_p13 }
 0x124   : > { %v554_v26 = vpop.permute.xlu0 %553 }
 0x125   : > { %v556_v34 = vrot.slane %v554_v26, 4  ;;  %v564_v60 = vadd.f32 %v554_v26, %v531_v58 }
 0x128   : > { %v595_v28 = vpop.permute.xlu0 %594 }
 0x129   : > { %v597_v29 = vrot.slane %v595_v28, 4  ;;  %v604_v0 = vadd.f32 %v595_v28, %v564_v60 }
 0x12d   : > { %v694_v27 = vpop.permute.xlu1 %693 }
 0x131   : > { %v552_v30 = vpop.permute.xlu1 %551 }
 0x132   : > { %v555_v33 = vrot.slane %v552_v30, 4 }
 0x134   : > { %v1375_v20 = vpop.permute.xlu0 %758  ;;  %v558_v39 = vsel %vm557_vm11, %v555_v33, %v556_v34 }
 0x135   : > { %v658_v32 = vpop.permute.xlu1 %657  ;;  %v560_v45 = vsel %vm559_vm6, %v552_v30, %v558_v39  ;;  %v762_v11 = vrot.slane %v1375_v20, 4 }
 0x136   : > { %v563_v51 = vadd.f32 %v560_v45, %v530_v48  ;;  %v659_v57 = vrot.slane %v658_v32, 4 }
 0x137   : > { %v764_v17 = vsel %vm763_vm0, %v762_v11, %v1375_v20 }
 0x138   : > { %v761_v35 = vpop.permute.xlu0 %760  ;;  %v660_v62 = vsel %vm512_vm10, %v659_v57, %v658_v32 }
 0x139   : > { %v593_v37 = vpop.permute.xlu1 %592  ;;  %v765_v22 = vsel %vm763_vm0, %v762_v11, %v761_v35 }
 0x13a   : > { %v596_v40 = vrot.slane %v593_v37, 4 }
 0x13c   : > { %v598_v42 = vsel %vm557_vm11, %v596_v40, %v597_v29  ;;  %v633_v44 = vpop.permute.xlu0 %632 }
 0x13d   : > { %v635_v46 = vrot.slane %v633_v44, 4  ;;  %v631_v47 = vpop.permute.xlu1 %630  ;;  %v600_v50 = vsel %vm599_vm12, %v593_v37, %v598_v42  ;;  %v642_v3 = vadd.f32 %v633_v44, %v604_v0 }
 0x13e   : > { %v634_v49 = vrot.slane %v631_v47, 4  ;;  %v603_v43 = vadd.f32 %v600_v50, %v563_v51 }
 0x13f   : > { %v664_v9 = vadd.f32 %v659_v57, %v642_v3 }
 0x140   : > { %v636_v52 = vsel %vm557_vm11, %v634_v49, %v635_v46  ;;  %v692_v53 = vpop.permute.xlu0 %691 }
 0x141   : > { %v638_v55 = vsel %vm637_vm13, %v631_v47, %v636_v52  ;;  %v695_v63 = vrot.slane %v692_v53, 4  ;;  %v732_v4 = vpop.permute.xlu1 %731 }
 0x142   : > { %v641_v59 = vadd.f32 %v638_v55, %v603_v43 }
 0x143   : > { %v697_v5 = vsel %vm696_vm14, %v695_v63, %v692_v53  ;;  %v698_v7 = vsel %vm696_vm14, %v695_v63, %v694_v27 }
 0x144   : > { %v730_v61 = vpop.permute.xlu0 %729  ;;  %v663_v1 = vadd.f32 %v660_v62, %v641_v59  ;;  %v702_v13 = vadd.f32 %v698_v7, %v664_v9 }
 0x145   : > { %v733_v2 = vrot.slane %v730_v61, 4 }
 0x146   : > { %v701_v6 = vadd.f32 %v697_v5, %v663_v1 }
 0x147   : > { %v735_v8 = vsel %vm734_vm15, %v733_v2, %v730_v61  ;;  %v736_v12 = vsel %vm734_vm15, %v733_v2, %v732_v4 }
 0x148   : > { %v739_v14 = vadd.f32 %v735_v8, %v701_v6  ;;  %v740_v16 = vadd.f32 %v736_v12, %v702_v13 }
 0x14a   : > { %v768_v21 = vadd.f32 %v764_v17, %v739_v14  ;;  %v769_v28 = vadd.f32 %v765_v22, %v740_v16 }
 0x14e   : > { %v809_v10 = vpop.permute.xlu1 %808 }
 0x14f   : > { %v816_v25 = vrot.slane %v809_v10, %v1340_v24 }
 0x151   : > { %v823_v19 = vpop.permute.xlu0 %822 }
 0x152   : > { %v795_v15 = vpop.permute.xlu1 %794  ;;  %v830_v30 = vrot.slane %v823_v19, %v1340_v24 }
 0x153   : > { %v798_v18 = vrot.slane %v795_v15, 4 }
 0x155   : > { %v800_v23 = vsel %vm799_vm1, %v798_v18, %v795_v15 }
 0x156   : > { %v804_v26 = vadd.f32 %v800_v23, %v768_v21  ;;  %v797_v27 = vpop.permute.xlu1 %796 }
 0x157   : > { %v801_v20 = vsel %vm799_vm1, %v798_v18, %v797_v27 }
 0x158   : > { %v805_v31 = vadd.f32 %v801_v20, %v769_v28  ;;  %v818_v32 = vmul.f32 %v816_v25, %v804_v26 }
 0x159   : > { %1092 = shalt.err (!%p1089_p3)
}
 0x15a   : > { %s1093_s25 = scalar_lea.hbm %s1396_s13, 128  ;;  %s1097_s22 = scalar_lea.hbm %s1471_s7, 256 }
 0x15b   : > { %p1094_p4 = scmp.ne.s32.totalorder %s1396_s13, %s1093_s25  ;;  %p1098_p9 = scmp.lt.s32.totalorder %s1396_s13, %s1471_s7 }
 0x15c   : > { %p1099_p10 = scmp.lt.s32.totalorder %s1097_s22, %s1093_s25 }
 0x15d   : > { %p1095_p7 = pnand %p1094_p4, %p1279_p5 }
 0x15e   : > { %p1100_p11 = por %p1099_p10, %p1098_p9 }
 0x15f   : > { %p1096_p8 = pneg %p1095_p7 }
 0x161   : > { %p1101_p12 = pnand %p1100_p11, %p1096_p8 }
 0x163   : > { %1104 = shalt.err (!%p1101_p12)
}
 0x164   : > { %996 = dma.vmem_to_hbm [thread:$0]  (%p1279_p5), %s869_s19, 128, %s1396_s13, %s849_s20   ;;  %v819_v24 = vmul.f32 %v816_v25, %v805_v31  ;;  %v832_v33 = vadd.f32 %v830_v30, %v818_v32 }
 0x165   : > { %s1479_s24 = smov 17   ;;  %s1480_s17 = sshll.u32 %s1327_s23, 3 }
 0x166   : > { %v833_v34 = vadd.f32 %v830_v30, %v819_v24  ;;  %v834_v35 = vmax.f32 %v832_v33, 0.0  ;;  %s309_s12 = scalar_lea.vmem [#allocation5], %s1480_s17  ;;  %s1481_s13 = sshll.u32 %s1262_s9, 7 }
 0x167   : > { %s882_s21 = sshll.u32 %s309_s12, 4  ;;  %s1427_s10 = scalar_lea.hbm %s1472_s8, %s1481_s13  ;;  %s883_s21 = int_to_ptr.vmem [resolvable:$true] %s882_s21 }
 0x168   : > { %v835_v36 = vmax.f32 %v833_v34, 0.0  ;;  %838 = vrot.lane.b32.xlu1 %v834_v35, %s1479_s24  ;;  %s854_s25 = scalar_lea.sflag [#allocation6], %s1327_s23  ;;  %s1105_s18 = scalar_lea.vmem %s883_s21, 128 }
 0x169   : > { %p1106_p13 = scmp.ne.s32.totalorder %s883_s21, %s1105_s18  ;;  %s1195_s26 = smov [#allocation5]  }
 0x16a   : > { %840 = vrot.lane.b32.xlu0 %v835_v36, %s1479_s24  ;;  %s1109_s22 = sshll.u32 %s1195_s26, 4  ;;  %s1110_s22 = int_to_ptr.vmem [resolvable:$false] %s1109_s22 }
 0x16b   : > { %p1107_p0 = pnand %p1106_p13, %p1279_p5  ;;  %s1111_s24 = scalar_lea.vmem %s1110_s22, 256 }
 0x16c   : > { %p1112_p2 = scmp.lt.s32.totalorder %s883_s21, %s1110_s22  ;;  %p1113_p3 = scmp.lt.s32.totalorder %s1111_s24, %s1105_s18 }
 0x16d   : > { %p1108_p1 = pneg %p1107_p0 }
 0x16e   : > { %p1114_p4 = por %p1113_p3, %p1112_p2 }
 0x170   : > { %p1115_p7 = pnand %p1114_p4, %p1108_p1 }
 0x1da   : > { %v839_v37 = vpop.permute.xlu1 %838 }
 0x1db   : > { %v842_v29 = vrot.slane %v839_v37, 4 }
 0x1dc   : > { %v841_v38 = vpop.permute.xlu0 %840 }
 0x1dd   : > { %v843_v39 = vrot.slane %v841_v38, 4 }
 0x1df   : > { %v844_v40 = vsel %vm557_vm11, %v842_v29, %v843_v39 }
 0x1e0   : > { %v845_v41 = vsel %vm773_vm9, %v839_v37, %v844_v40 }
 0x1e1   : > { %847 = vst [vmem:[%s309_s12] sm:$0xff] %v845_v41 }
 0x1e2   : > { %1118 = shalt.err (!%p1115_p7)
}
 0x1e3   : > { %s1119_s9 = scalar_lea.hbm %s1427_s10, 128  ;;  %s1123_s12 = scalar_lea.hbm %s1472_s8, 256 }
 0x1e4   : > { %p1120_p8 = scmp.ne.s32.totalorder %s1427_s10, %s1119_s9  ;;  %p1124_p11 = scmp.lt.s32.totalorder %s1427_s10, %s1472_s8 }
 0x1e5   : > { %p1125_p12 = scmp.lt.s32.totalorder %s1123_s12, %s1119_s9 }
 0x1e6   : > { %p1121_p9 = pnand %p1120_p8, %p1279_p5 }
 0x1e7   : > { %p1126_p13 = por %p1125_p12, %p1124_p11 }
 0x1e8   : > { %p1122_p10 = pneg %p1121_p9 }
 0x1ea   : > { %p1127_p0 = pnand %p1126_p13, %p1122_p10 }
 0x1ec   : > { %1130 = shalt.err (!%p1127_p0)
}
 0x1ed   : > { %997 = dma.vmem_to_hbm [thread:$0]  (%p1279_p5), %s883_s21, 128, %s1427_s10, %s854_s25  }
 0x1ee PF: > { %p1007_p1 = scmp.ge.s32.totalorder %s1169_s30, 2  ;;  %s894_s20 = sand.u32 1, %s1157_s27  }
 0x1ef   : > { %s895_s18 = scalar_lea.sflag [#allocation4], %s894_s20 }
 0x1f0   : > { %p1001_p2 = pnand %p1007_p1, %p1283_p6 }
 0x1f2   : > { %p1002_p3 = pneg %p1001_p2 }
 0x1f4   : > { %1148 = dma.done.wait (%p1002_p3), %s895_s18, 128  }
 0x1f5   : > { %1150 = vsyncadd (%p1002_p3), %s895_s18, 4294967168  ;;  %s904_s26 = scalar_lea.sflag [#allocation6], %s894_s20 }
 0x1f6   : > { %1152 = dma.done.wait (%p1002_p3), %s904_s26, 128  }
 0x1f7   : > { %1154 = vsyncadd (%p1002_p3), %s904_s26, 4294967168  ;;  %p22_p5 = scmp.ge.s32.totalorder %s1266_s11, 4   ;;  %s1482_s27 = smov %s1161_s28 }
 0x1f8   : > { %s1483_s28 = smov %s1165_s29  ;;  %s1484_s29 = smov %s1277_s14 }
 0x1f9   : > { %s1485_s30 = smov %s1266_s11  ;;  %24 = sbr.rel (!%p22_p5) target bundleno = 5 (0x5), region = 100 }
 0x1fe   :  { %909 = vsyncpa [#allocation4], 1 }
 0x1ff   :  { %911 = vsyncpa [#allocation4 + $0x1], 1 }
 0x200   :  { %912 = vsyncpa [#allocation6], 1 }
 0x201   :  { %914 = vsyncpa [#allocation6 + $0x1], 1 }

</bundles_post_ra>
